<compile_context>
chip_gen: v6e
topology: v6e:2x2x1
jax: 0.10.0
libtpu: 0.0.40
codegen_flags: <defaults>
</compile_context>

<pallas_src>
import functools

import jax
import jax.numpy as jnp
from jax import lax
from jax.experimental import pallas as pl
from jax.experimental.pallas import tpu as pltpu

EPS = 1e-8


def _conv1d_block_kernel(x_ref, w1_ref, b1_ref, a1_ref, gamma_ref, beta_ref,
                         wdw_ref, bdw_ref, a2_ref, wres_ref, bres_ref,
                         out_ref, *,
                         kernel_size, padding, dilation, batch_block, t_in, t_out):
    """One grid step == `batch_block` batch elements of a (bblk, C, T) block."""
    # ---- hoist all loop-invariant loads / broadcasts (JAX does not CSE them) ----
    w1 = w1_ref[...]                 # (hid, c_in)
    b1 = b1_ref[...]                 # (hid, 1)
    gamma = gamma_ref[...]           # (hid, 1)
    beta = beta_ref[...]             # (hid, 1)
    bdw = bdw_ref[...]               # (hid, 1)
    wres = wres_ref[...]             # (c_in, hid)
    bres = bres_ref[...]             # (c_in, 1)
    a1 = a1_ref[0, 0]                # PReLU alphas (SMEM scalars)
    a2 = a2_ref[0, 0]
    mm_dtype = wres.dtype            # residual-matmul operand dtype (bf16 stays bf16)

    # Per-tap weights, shifts and edge masks: identical for every batch element,
    # so build them ONCE per grid step (not inside the batch loop).
    tap_w = [wdw_ref[:, k:k + 1] for k in range(kernel_size)]      # (hid, 1) each
    same_len = (t_out == t_in)
    shifts = [padding - k * dilation for k in range(kernel_size)]  # static ints
    masks = {}
    if same_len:
        t_idx = lax.broadcasted_iota(jnp.int32, (1, t_out), 1)
        for k, s in enumerate(shifts):
            if s != 0:   # mask required whenever shift != 0, even if s % t_in == 0
                masks[k] = (t_idx >= s) & (t_idx < t_in + s)

    def glob_ln(v):
        # z-norm over (chan, time) of one batch element, then per-channel affine.
        # Single pass: sum and sum-of-squares in the same sweep; rsqrt -> EUP;
        # gamma folded into the scale, beta (and -mean*scale) into the shift.
        inv_n = 1.0 / float(v.shape[0] * v.shape[1])
        mean = jnp.sum(v) * inv_n
        var = jnp.maximum(jnp.sum(v * v) * inv_n - mean * mean, 0.0)  # unbiased=False
        scale = gamma * lax.rsqrt(var + EPS)                          # (hid, 1)
        return v * scale + (beta - mean * scale)

    def depthwise(v):
        # v: (hid, t_in) -> (hid, t_out); per-channel weight (hid, K), dilation,
        # symmetric zero padding.
        if same_len:
            # "same"-length case: each tap is a lane rotation (XLU) + hoisted edge
            # mask; no padded copy, no unaligned lane slices.
            acc = None
            for k in range(kernel_size):
                s = shifts[k]
                r = s % t_in
                tap = v if r == 0 else pltpu.roll(v, r, axis=1)
                if s != 0:                                   # zero wrapped edge lanes
                    tap = jnp.where(masks[k], tap, 0.0)
                term = tap_w[k] * tap
                acc = term + bdw if acc is None else acc + term   # bias folded into tap 0
            return acc
        # General fallback (t_out != t_in): explicit zero pad + static slices.
        hid = v.shape[0]
        if padding > 0:
            zpad = jnp.zeros((hid, padding), jnp.float32)
            v = jnp.concatenate([zpad, v, zpad], axis=1)
        acc = tap_w[0] * v[:, 0:t_out] + bdw
        for k in range(1, kernel_size):
            acc = acc + tap_w[k] * v[:, k * dilation:k * dilation + t_out]
        return acc

    def body(b, carry):
        xb = x_ref[b]                                                    # (c_in, t_in)
        # 1x1 bottleneck conv: (hid, c_in) @ (c_in, t_in) on the MXU, f32 accum.
        yb = jnp.dot(w1, xb, preferred_element_type=jnp.float32) + b1
        yb = jnp.where(yb > 0, yb, a1 * yb)                              # PReLU #1
        yb = glob_ln(yb)                                                 # GlobLN #1
        zb = depthwise(yb)                                               # depthwise dilated conv
        zb = jnp.where(zb > 0, zb, a2 * zb)                              # PReLU #2
        zb = glob_ln(zb)                                                 # GlobLN #2
        # Residual 1x1 conv straight to the output block (no scratch round-trip).
        res = jnp.dot(wres, zb.astype(mm_dtype),
                      preferred_element_type=jnp.float32) + bres
        out_ref[b] = res.astype(out_ref.dtype)
        return carry

    if batch_block == 1:
        body(0, 0)                        # static index, no loop machinery
    else:
        lax.fori_loop(0, batch_block, body, 0)


def _pick_batch_block(B, c_in, c_hid, t_in, t_out, itemsize,
                      budget_bytes=16 * 2**20):
    """Largest batch block (dividing B) whose per-step VMEM footprint fits the
    budget, preferring >= 2 grid steps so both v7x TensorCores get work."""
    def step_bytes(bb):
        io = 2 * bb * c_in * (t_in + t_out) * itemsize      # double-buffered in/out blocks
        inter = 6 * c_hid * max(t_in, t_out) * 4            # live f32 intermediates (one b)
        params = 4 * (c_hid * (c_in + 8) + c_in * (c_hid + 1))
        return io + inter + params

    divisors = [bb for bb in range(1, B + 1) if B % bb == 0]
    fitting = [bb for bb in divisors if step_bytes(bb) <= budget_bytes] or [1]
    pref = [bb for bb in fitting if B // bb >= 2]            # keep the parallel axis >= 2
    bb = max(pref) if pref else max(fitting)
    est = step_bytes(bb)
    # TODO(synk): fall back to a time-tiled grid instead of asserting when even
    #             bblk=1 does not fit (production T on v7x).
    assert est <= 48 * 2**20, (
        f"per-step VMEM estimate {est} B exceeds the safe 48 MiB cap; "
        "time tiling required for this shape")
    return bb, B // bb, est


def conv1d_block(x, params, *, kernel_size, padding, dilation):
    B, c_in, t_in = x.shape
    c_hid = params["w1"].shape[0]
    t_out = t_in + 2 * padding - dilation * (kernel_size - 1)
    assert t_out > 0

    bblk, n_blocks, step_bytes = _pick_batch_block(
        B, c_in, c_hid, t_in, t_out, jnp.dtype(x.dtype).itemsize)

    kernel = functools.partial(_conv1d_block_kernel, kernel_size=kernel_size,
                               padding=padding, dilation=dilation,
                               batch_block=bblk, t_in=t_in, t_out=t_out)

    # 2-D reshapes for TPU-friendly (sublane, lane) layouts of 1-D params.
    b1 = params["b1"].reshape(c_hid, 1)
    gamma = params["gamma"].reshape(c_hid, 1)
    beta = params["beta"].reshape(c_hid, 1)
    bdw = params["bdw"].reshape(c_hid, 1)
    bres = params["bres"].reshape(c_in, 1)
    a1 = params["a1"].reshape(1, 1)
    a2 = params["a2"].reshape(1, 1)

    full = lambda shape: pl.BlockSpec(shape, lambda i: (0,) * len(shape))
    smem = pl.BlockSpec(memory_space=pltpu.MemorySpace.SMEM)

    out = pl.pallas_call(
        kernel,
        out_shape=jax.ShapeDtypeStruct((B, c_in, t_out), x.dtype),
        grid=(n_blocks,),
        in_specs=[
            pl.BlockSpec((bblk, c_in, t_in), lambda i: (i, 0, 0)),   # x block (no transpose)
            full((c_hid, c_in)),                                     # w1
            full((c_hid, 1)),                                        # b1
            smem,                                                    # a1 (PReLU #1)
            full((c_hid, 1)),                                        # gamma
            full((c_hid, 1)),                                        # beta
            full((c_hid, kernel_size)),                              # depthwise weight
            full((c_hid, 1)),                                        # depthwise bias
            smem,                                                    # a2 (PReLU #2)
            full((c_in, c_hid)),                                     # res_conv weight
            full((c_in, 1)),                                         # res_conv bias
        ],
        out_specs=pl.BlockSpec((bblk, c_in, t_out), lambda i: (i, 0, 0)),
        compiler_params=pltpu.CompilerParams(
            dimension_semantics=("parallel",),            # batch blocks are independent
            vmem_limit_bytes=int(min(48 * 2**20, max(32 * 2**20, 3 * step_bytes))),
        ),
    )(x, params["w1"], b1, a1, gamma, beta, params["wdw"], bdw, a2,
      params["wres"], bres)

    return out


def conv1d_block_reference(x, p, *, kernel_size, padding, dilation):
    """Pure-JAX reference mirroring the PyTorch forward (delta=False)."""
    def glob_ln(y):
        mean = jnp.mean(y, axis=(1, 2), keepdims=True)
        var = jnp.mean((y - mean) ** 2, axis=(1, 2), keepdims=True)
        n = (y - mean) / jnp.sqrt(var + EPS)
        return p["gamma"][None, :, None] * n + p["beta"][None, :, None]

    B, c_in, T = x.shape
    c_hid = p["w1"].shape[0]
    t_out = T + 2 * padding - dilation * (kernel_size - 1)

    y = jnp.einsum("oc,bct->bot", p["w1"], x) + p["b1"][None, :, None]
    y = jnp.where(y > 0, y, p["a1"][0] * y)
    y = glob_ln(y)
    ypad = jnp.pad(y, ((0, 0), (0, 0), (padding, padding)))
    z = jnp.zeros((B, c_hid, t_out), jnp.float32)
    for k in range(kernel_size):
        z = z + p["wdw"][None, :, k:k + 1] * ypad[:, :, k * dilation:k * dilation + t_out]
    z = z + p["bdw"][None, :, None]
    z = jnp.where(z > 0, z, p["a2"][0] * z)
    z = glob_ln(z)
    return jnp.einsum("oc,bct->bot", p["wres"], z) + p["bres"][None, :, None]


if __name__ == "__main__":
    # Small shapes consistent with the module's forward ([batch, feats, seq]).
    B, IN_CHAN, HID_CHAN, T = 2, 16, 32, 128
    KERNEL_SIZE, DILATION = 3, 2
    PADDING = DILATION * (KERNEL_SIZE - 1) // 2           # "same" length output

    key = jax.random.PRNGKey(0)
    ks = jax.random.split(key, 8)
    params = {
        "w1":   0.1 * jax.random.normal(ks[0], (HID_CHAN, IN_CHAN), jnp.float32),
        "b1":   0.1 * jax.random.normal(ks[1], (HID_CHAN,), jnp.float32),
        "a1":   jnp.full((1,), 0.25, jnp.float32),        # PReLU default init
        "gamma": jnp.ones((HID_CHAN,), jnp.float32),      # GlobLN init
        "beta":  jnp.zeros((HID_CHAN,), jnp.float32),
        "wdw":  0.1 * jax.random.normal(ks[2], (HID_CHAN, KERNEL_SIZE), jnp.float32),
        "bdw":  0.1 * jax.random.normal(ks[3], (HID_CHAN,), jnp.float32),
        "a2":   jnp.full((1,), 0.25, jnp.float32),
        "wres": 0.1 * jax.random.normal(ks[4], (IN_CHAN, HID_CHAN), jnp.float32),
        "bres": 0.1 * jax.random.normal(ks[5], (IN_CHAN,), jnp.float32),
    }
    x = jax.random.normal(ks[6], (B, IN_CHAN, T), jnp.float32)

    out = conv1d_block(x, params, kernel_size=KERNEL_SIZE, padding=PADDING,
                       dilation=DILATION)
    out = jax.block_until_ready(out)

    ref = conv1d_block_reference(x, params, kernel_size=KERNEL_SIZE,
                                 padding=PADDING, dilation=DILATION)
    assert out.shape == ref.shape, (out.shape, ref.shape)
    assert jnp.max(jnp.abs(out - ref)) < 1e-4, float(jnp.max(jnp.abs(out - ref)))

    print("KERNEL_OK")
</pallas_src>

<mosaic_0001>
module attributes {stable_mosaic.version = 11 : i64} {
  func.func @_conv1d_block_kernel(%arg0: i32, %arg1: memref<1x16x128xf32, #tpu.memory_space<vmem>>, %arg2: memref<32x16xf32, #tpu.memory_space<vmem>>, %arg3: memref<32x1xf32, #tpu.memory_space<vmem>>, %arg4: memref<1x1xf32, #tpu.memory_space<smem>>, %arg5: memref<32x1xf32, #tpu.memory_space<vmem>>, %arg6: memref<32x1xf32, #tpu.memory_space<vmem>>, %arg7: memref<32x3xf32, #tpu.memory_space<vmem>>, %arg8: memref<32x1xf32, #tpu.memory_space<vmem>>, %arg9: memref<1x1xf32, #tpu.memory_space<smem>>, %arg10: memref<16x32xf32, #tpu.memory_space<vmem>>, %arg11: memref<16x1xf32, #tpu.memory_space<vmem>>, %arg12: memref<1x16x128xf32, #tpu.memory_space<vmem>>) attributes {dimension_semantics = [#tpu.dimension_semantics<parallel>], iteration_bounds = array<i64: 2>, scalar_prefetch = 0 : i64, scratch_operands = 0 : i64, tpu.core_type = #tpu.core_type<tc>, window_params = [{transform_indices = @transform_0, window_bounds = array<i64: 1, 16, 128>}, {pipeline_mode = #tpu.pipeline_mode<synchronous>, transform_indices = @transform_1, window_bounds = array<i64: 32, 16>}, {pipeline_mode = #tpu.pipeline_mode<synchronous>, transform_indices = @transform_2, window_bounds = array<i64: 32, 1>}, {transform_indices = @transform_3, window_bounds = array<i64: 1, 1>}, {pipeline_mode = #tpu.pipeline_mode<synchronous>, transform_indices = @transform_4, window_bounds = array<i64: 32, 1>}, {pipeline_mode = #tpu.pipeline_mode<synchronous>, transform_indices = @transform_5, window_bounds = array<i64: 32, 1>}, {pipeline_mode = #tpu.pipeline_mode<synchronous>, transform_indices = @transform_6, window_bounds = array<i64: 32, 3>}, {pipeline_mode = #tpu.pipeline_mode<synchronous>, transform_indices = @transform_7, window_bounds = array<i64: 32, 1>}, {transform_indices = @transform_8, window_bounds = array<i64: 1, 1>}, {pipeline_mode = #tpu.pipeline_mode<synchronous>, transform_indices = @transform_9, window_bounds = array<i64: 16, 32>}, {pipeline_mode = #tpu.pipeline_mode<synchronous>, transform_indices = @transform_10, window_bounds = array<i64: 16, 1>}, {transform_indices = @transform_11, window_bounds = array<i64: 1, 16, 128>}]} {
    %c0 = arith.constant 0 : index
    %c0_0 = arith.constant 0 : index
    %0 = vector.load %arg2[%c0, %c0_0] : memref<32x16xf32, #tpu.memory_space<vmem>>, vector<32x16xf32>
    %c0_1 = arith.constant 0 : index
    %c0_2 = arith.constant 0 : index
    %1 = vector.load %arg3[%c0_1, %c0_2] : memref<32x1xf32, #tpu.memory_space<vmem>>, vector<32x1xf32>
    %c0_3 = arith.constant 0 : index
    %c0_4 = arith.constant 0 : index
    %2 = vector.load %arg5[%c0_3, %c0_4] : memref<32x1xf32, #tpu.memory_space<vmem>>, vector<32x1xf32>
    %c0_5 = arith.constant 0 : index
    %c0_6 = arith.constant 0 : index
    %3 = vector.load %arg6[%c0_5, %c0_6] : memref<32x1xf32, #tpu.memory_space<vmem>>, vector<32x1xf32>
    %c0_7 = arith.constant 0 : index
    %c0_8 = arith.constant 0 : index
    %4 = vector.load %arg8[%c0_7, %c0_8] : memref<32x1xf32, #tpu.memory_space<vmem>>, vector<32x1xf32>
    %c0_9 = arith.constant 0 : index
    %c0_10 = arith.constant 0 : index
    %5 = vector.load %arg10[%c0_9, %c0_10] : memref<16x32xf32, #tpu.memory_space<vmem>>, vector<16x32xf32>
    %c0_11 = arith.constant 0 : index
    %c0_12 = arith.constant 0 : index
    %6 = vector.load %arg11[%c0_11, %c0_12] : memref<16x1xf32, #tpu.memory_space<vmem>>, vector<16x1xf32>
    %c0_13 = arith.constant 0 : index
    %c0_14 = arith.constant 0 : index
    %7 = memref.load %arg4[%c0_13, %c0_14] : memref<1x1xf32, #tpu.memory_space<smem>>
    %c0_15 = arith.constant 0 : index
    %c0_16 = arith.constant 0 : index
    %8 = memref.load %arg9[%c0_15, %c0_16] : memref<1x1xf32, #tpu.memory_space<smem>>
    %c0_17 = arith.constant 0 : index
    %c0_18 = arith.constant 0 : index
    %9 = vector.load %arg7[%c0_17, %c0_18] : memref<32x3xf32, #tpu.memory_space<vmem>>, vector<32x1xf32>
    %c0_19 = arith.constant 0 : index
    %c1 = arith.constant 1 : index
    %10 = vector.load %arg7[%c0_19, %c1] : memref<32x3xf32, #tpu.memory_space<vmem>>, vector<32x1xf32>
    %c0_20 = arith.constant 0 : index
    %c2 = arith.constant 2 : index
    %11 = vector.load %arg7[%c0_20, %c2] : memref<32x3xf32, #tpu.memory_space<vmem>>, vector<32x1xf32>
    %12 = tpu.iota {dimensions = array<i32: 1>} : vector<1x128xi32>
    %c2_i32 = arith.constant 2 : i32
    %13 = vector.broadcast %c2_i32 : i32 to vector<1x128xi32>
    %14 = arith.cmpi sge, %12, %13 : vector<1x128xi32>
    %c130_i32 = arith.constant 130 : i32
    %15 = vector.broadcast %c130_i32 : i32 to vector<1x128xi32>
    %16 = arith.cmpi slt, %12, %15 : vector<1x128xi32>
    %17 = arith.andi %14, %16 : vector<1x128xi1>
    %c-2_i32 = arith.constant -2 : i32
    %18 = vector.broadcast %c-2_i32 : i32 to vector<1x128xi32>
    %19 = arith.cmpi sge, %12, %18 : vector<1x128xi32>
    %c126_i32 = arith.constant 126 : i32
    %20 = vector.broadcast %c126_i32 : i32 to vector<1x128xi32>
    %21 = arith.cmpi slt, %12, %20 : vector<1x128xi32>
    %22 = arith.andi %19, %21 : vector<1x128xi1>
    %c0_21 = arith.constant 0 : index
    %c0_22 = arith.constant 0 : index
    %c0_23 = arith.constant 0 : index
    %23 = vector.load %arg1[%c0_21, %c0_22, %c0_23] : memref<1x16x128xf32, #tpu.memory_space<vmem>>, vector<1x16x128xf32>
    %24 = vector.shape_cast %23 : vector<1x16x128xf32> to vector<16x128xf32>
    %cst = arith.constant dense<0.000000e+00> : vector<32x128xf32>
    %25 = tpu.matmul %0, %24, %cst {dimension_numbers = #tpu.dot_dimension_numbers<[1], [0], [0], [1], [0, 0, 1, 1], [], []>} : vector<32x16xf32>, vector<16x128xf32>, vector<32x128xf32> -> vector<32x128xf32>
    %26 = vector.broadcast %1 : vector<32x1xf32> to vector<32x128xf32>
    %27 = arith.addf %25, %26 : vector<32x128xf32>
    %cst_24 = arith.constant 0.000000e+00 : f32
    %28 = vector.broadcast %cst_24 : f32 to vector<32x128xf32>
    %29 = arith.cmpf ogt, %27, %28 : vector<32x128xf32>
    %30 = vector.broadcast %7 : f32 to vector<32x128xf32>
    %31 = arith.mulf %30, %27 : vector<32x128xf32>
    %32 = arith.select %29, %27, %31 : vector<32x128xi1>, vector<32x128xf32>
    %33 = vector.shape_cast %32 : vector<32x128xf32> to vector<1x32x128xf32>
    %cst_25 = arith.constant dense<0.000000e+00> : vector<1xf32>
    %34 = vector.multi_reduction <add>, %33, %cst_25 [1, 2] : vector<1x32x128xf32> to vector<1xf32>
    %35 = vector.shape_cast %34 : vector<1xf32> to vector<1x1x1xf32>
    %36 = vector.extract %35[0, 0, 0] : f32 from vector<1x1x1xf32>
    %cst_26 = arith.constant 2.44140625E-4 : f32
    %37 = arith.mulf %36, %cst_26 : f32
    %38 = arith.mulf %32, %32 : vector<32x128xf32>
    %39 = vector.shape_cast %38 : vector<32x128xf32> to vector<1x32x128xf32>
    %cst_27 = arith.constant dense<0.000000e+00> : vector<1xf32>
    %40 = vector.multi_reduction <add>, %39, %cst_27 [1, 2] : vector<1x32x128xf32> to vector<1xf32>
    %41 = vector.shape_cast %40 : vector<1xf32> to vector<1x1x1xf32>
    %42 = vector.extract %41[0, 0, 0] : f32 from vector<1x1x1xf32>
    %cst_28 = arith.constant 2.44140625E-4 : f32
    %43 = arith.mulf %42, %cst_28 : f32
    %44 = arith.mulf %37, %37 : f32
    %45 = arith.subf %43, %44 : f32
    %cst_29 = arith.constant 0.000000e+00 : f32
    %46 = arith.maximumf %45, %cst_29 : f32
    %cst_30 = arith.constant 9.99999993E-9 : f32
    %47 = arith.addf %46, %cst_30 : f32
    %48 = math.rsqrt %47 : f32
    %49 = vector.broadcast %48 : f32 to vector<32x1xf32>
    %50 = arith.mulf %2, %49 : vector<32x1xf32>
    %51 = vector.broadcast %50 : vector<32x1xf32> to vector<32x128xf32>
    %52 = arith.mulf %32, %51 : vector<32x128xf32>
    %53 = vector.broadcast %37 : f32 to vector<32x1xf32>
    %54 = arith.mulf %53, %50 : vector<32x1xf32>
    %55 = arith.subf %3, %54 : vector<32x1xf32>
    %56 = vector.broadcast %55 : vector<32x1xf32> to vector<32x128xf32>
    %57 = arith.addf %52, %56 : vector<32x128xf32>
    %c2_i32_31 = arith.constant 2 : i32
    %58 = tpu.dynamic_rotate %57 by %c2_i32_31 dim 1 : vector<32x128xf32>, i32 -> vector<32x128xf32>
    %cst_32 = arith.constant 0.000000e+00 : f32
    %59 = vector.shape_cast %17 : vector<1x128xi1> to vector<1x128xi1>
    %60 = vector.broadcast %59 : vector<1x128xi1> to vector<32x128xi1>
    %61 = vector.broadcast %cst_32 : f32 to vector<32x128xf32>
    %62 = arith.select %60, %58, %61 : vector<32x128xi1>, vector<32x128xf32>
    %63 = vector.broadcast %9 : vector<32x1xf32> to vector<32x128xf32>
    %64 = arith.mulf %63, %62 : vector<32x128xf32>
    %65 = vector.broadcast %4 : vector<32x1xf32> to vector<32x128xf32>
    %66 = arith.addf %64, %65 : vector<32x128xf32>
    %67 = vector.broadcast %10 : vector<32x1xf32> to vector<32x128xf32>
    %68 = arith.mulf %67, %57 : vector<32x128xf32>
    %69 = arith.addf %66, %68 : vector<32x128xf32>
    %c126_i32_33 = arith.constant 126 : i32
    %70 = tpu.dynamic_rotate %57 by %c126_i32_33 dim 1 : vector<32x128xf32>, i32 -> vector<32x128xf32>
    %cst_34 = arith.constant 0.000000e+00 : f32
    %71 = vector.shape_cast %22 : vector<1x128xi1> to vector<1x128xi1>
    %72 = vector.broadcast %71 : vector<1x128xi1> to vector<32x128xi1>
    %73 = vector.broadcast %cst_34 : f32 to vector<32x128xf32>
    %74 = arith.select %72, %70, %73 : vector<32x128xi1>, vector<32x128xf32>
    %75 = vector.broadcast %11 : vector<32x1xf32> to vector<32x128xf32>
    %76 = arith.mulf %75, %74 : vector<32x128xf32>
    %77 = arith.addf %69, %76 : vector<32x128xf32>
    %cst_35 = arith.constant 0.000000e+00 : f32
    %78 = vector.broadcast %cst_35 : f32 to vector<32x128xf32>
    %79 = arith.cmpf ogt, %77, %78 : vector<32x128xf32>
    %80 = vector.broadcast %8 : f32 to vector<32x128xf32>
    %81 = arith.mulf %80, %77 : vector<32x128xf32>
    %82 = arith.select %79, %77, %81 : vector<32x128xi1>, vector<32x128xf32>
    %83 = vector.shape_cast %82 : vector<32x128xf32> to vector<1x32x128xf32>
    %cst_36 = arith.constant dense<0.000000e+00> : vector<1xf32>
    %84 = vector.multi_reduction <add>, %83, %cst_36 [1, 2] : vector<1x32x128xf32> to vector<1xf32>
    %85 = vector.shape_cast %84 : vector<1xf32> to vector<1x1x1xf32>
    %86 = vector.extract %85[0, 0, 0] : f32 from vector<1x1x1xf32>
    %cst_37 = arith.constant 2.44140625E-4 : f32
    %87 = arith.mulf %86, %cst_37 : f32
    %88 = arith.mulf %82, %82 : vector<32x128xf32>
    %89 = vector.shape_cast %88 : vector<32x128xf32> to vector<1x32x128xf32>
    %cst_38 = arith.constant dense<0.000000e+00> : vector<1xf32>
    %90 = vector.multi_reduction <add>, %89, %cst_38 [1, 2] : vector<1x32x128xf32> to vector<1xf32>
    %91 = vector.shape_cast %90 : vector<1xf32> to vector<1x1x1xf32>
    %92 = vector.extract %91[0, 0, 0] : f32 from vector<1x1x1xf32>
    %cst_39 = arith.constant 2.44140625E-4 : f32
    %93 = arith.mulf %92, %cst_39 : f32
    %94 = arith.mulf %87, %87 : f32
    %95 = arith.subf %93, %94 : f32
    %cst_40 = arith.constant 0.000000e+00 : f32
    %96 = arith.maximumf %95, %cst_40 : f32
    %cst_41 = arith.constant 9.99999993E-9 : f32
    %97 = arith.addf %96, %cst_41 : f32
    %98 = math.rsqrt %97 : f32
    %99 = vector.broadcast %98 : f32 to vector<32x1xf32>
    %100 = arith.mulf %2, %99 : vector<32x1xf32>
    %101 = vector.broadcast %100 : vector<32x1xf32> to vector<32x128xf32>
    %102 = arith.mulf %82, %101 : vector<32x128xf32>
    %103 = vector.broadcast %87 : f32 to vector<32x1xf32>
    %104 = arith.mulf %103, %100 : vector<32x1xf32>
    %105 = arith.subf %3, %104 : vector<32x1xf32>
    %106 = vector.broadcast %105 : vector<32x1xf32> to vector<32x128xf32>
    %107 = arith.addf %102, %106 : vector<32x128xf32>
    %cst_42 = arith.constant dense<0.000000e+00> : vector<16x128xf32>
    %108 = tpu.matmul %5, %107, %cst_42 {dimension_numbers = #tpu.dot_dimension_numbers<[1], [0], [0], [1], [0, 0, 1, 1], [], []>} : vector<16x32xf32>, vector<32x128xf32>, vector<16x128xf32> -> vector<16x128xf32>
    %109 = vector.broadcast %6 : vector<16x1xf32> to vector<16x128xf32>
    %110 = arith.addf %108, %109 : vector<16x128xf32>
    %c0_43 = arith.constant 0 : index
    %c0_44 = arith.constant 0 : index
    %c0_45 = arith.constant 0 : index
    %111 = vector.load %arg12[%c0_43, %c0_44, %c0_45] : memref<1x16x128xf32, #tpu.memory_space<vmem>>, vector<1x16x128xf32>
    %112 = vector.shape_cast %111 : vector<1x16x128xf32> to vector<16x128xf32>
    %113 = vector.shape_cast %110 : vector<16x128xf32> to vector<1x16x128xf32>
    tpu.vector_store %arg12[%c0_43, %c0_44, %c0_45], %113 {strides = array<i32>} : memref<1x16x128xf32, #tpu.memory_space<vmem>>, vector<1x16x128xf32>,
    return
  }
  func.func @transform_0(%arg0: i32) -> (i32, i32, i32) {
    %c0_i32 = arith.constant 0 : i32
    %c0_i32_0 = arith.constant 0 : i32
    %c0_i32_1 = arith.constant 0 : i32
    return %arg0, %c0_i32, %c0_i32_0 : i32, i32, i32
  }
  func.func @transform_1(%arg0: i32) -> (i32, i32) {
    %c0_i32 = arith.constant 0 : i32
    %c0_i32_0 = arith.constant 0 : i32
    %c0_i32_1 = arith.constant 0 : i32
    return %c0_i32, %c0_i32_0 : i32, i32
  }
  func.func @transform_2(%arg0: i32) -> (i32, i32) {
    %c0_i32 = arith.constant 0 : i32
    %c0_i32_0 = arith.constant 0 : i32
    %c0_i32_1 = arith.constant 0 : i32
    return %c0_i32, %c0_i32_0 : i32, i32
  }
  func.func @transform_3(%arg0: i32) -> (i32, i32) {
    %c0_i32 = arith.constant 0 : i32
    %c0_i32_0 = arith.constant 0 : i32
    %c0_i32_1 = arith.constant 0 : i32
    return %c0_i32, %c0_i32_0 : i32, i32
  }
  func.func @transform_4(%arg0: i32) -> (i32, i32) {
    %c0_i32 = arith.constant 0 : i32
    %c0_i32_0 = arith.constant 0 : i32
    %c0_i32_1 = arith.constant 0 : i32
    return %c0_i32, %c0_i32_0 : i32, i32
  }
  func.func @transform_5(%arg0: i32) -> (i32, i32) {
    %c0_i32 = arith.constant 0 : i32
    %c0_i32_0 = arith.constant 0 : i32
    %c0_i32_1 = arith.constant 0 : i32
    return %c0_i32, %c0_i32_0 : i32, i32
  }
  func.func @transform_6(%arg0: i32) -> (i32, i32) {
    %c0_i32 = arith.constant 0 : i32
    %c0_i32_0 = arith.constant 0 : i32
    %c0_i32_1 = arith.constant 0 : i32
    return %c0_i32, %c0_i32_0 : i32, i32
  }
  func.func @transform_7(%arg0: i32) -> (i32, i32) {
    %c0_i32 = arith.constant 0 : i32
    %c0_i32_0 = arith.constant 0 : i32
    %c0_i32_1 = arith.constant 0 : i32
    return %c0_i32, %c0_i32_0 : i32, i32
  }
  func.func @transform_8(%arg0: i32) -> (i32, i32) {
    %c0_i32 = arith.constant 0 : i32
    %c0_i32_0 = arith.constant 0 : i32
    %c0_i32_1 = arith.constant 0 : i32
    return %c0_i32, %c0_i32_0 : i32, i32
  }
  func.func @transform_9(%arg0: i32) -> (i32, i32) {
    %c0_i32 = arith.constant 0 : i32
    %c0_i32_0 = arith.constant 0 : i32
    %c0_i32_1 = arith.constant 0 : i32
    return %c0_i32, %c0_i32_0 : i32, i32
  }
  func.func @transform_10(%arg0: i32) -> (i32, i32) {
    %c0_i32 = arith.constant 0 : i32
    %c0_i32_0 = arith.constant 0 : i32
    %c0_i32_1 = arith.constant 0 : i32
    return %c0_i32, %c0_i32_0 : i32, i32
  }
  func.func @transform_11(%arg0: i32) -> (i32, i32, i32) {
    %c0_i32 = arith.constant 0 : i32
    %c0_i32_0 = arith.constant 0 : i32
    %c0_i32_1 = arith.constant 0 : i32
    return %arg0, %c0_i32, %c0_i32_0 : i32, i32, i32
  }
}

</mosaic_0001>

<bundles_post_ra>
// kernel: tpu_custom_call.1
= control target key start
LH: loop header
LB: loop body
LE: loop exit
PB: predicated region body
PF: predicated region fallthrough
CT: control target
= control target key end

     0   :  { %s1625_s0 = inlined_call_operand.vmem [shape: f32[2,16,128], index: 0, kind: input, shape index: {}]   ;;  %s1626_s1 = inlined_call_operand.vmem [shape: f32[32,16], index: 1, kind: input, shape index: {}]   ;;  %s1627_s2 = inlined_call_operand.vmem [shape: f32[32,1], index: 2, kind: input, shape index: {}]   ;;  %s1628_s3 = inlined_call_operand.<no memory space> [shape: f32[1,1], index: 3, kind: input, shape index: {}]   ;;  %s1629_s4 = inlined_call_operand.vmem [shape: f32[32,1], index: 4, kind: input, shape index: {}]   ;;  %s1630_s5 = inlined_call_operand.vmem [shape: f32[32,1], index: 5, kind: input, shape index: {}]   ;;  %s1631_s6 = inlined_call_operand.vmem [shape: f32[32,3], index: 6, kind: input, shape index: {}]   ;;  %s1632_s7 = inlined_call_operand.vmem [shape: f32[32,1], index: 7, kind: input, shape index: {}]   ;;  %s1633_s8 = inlined_call_operand.<no memory space> [shape: f32[1,1], index: 8, kind: input, shape index: {}]   ;;  %s1634_s9 = inlined_call_operand.vmem [shape: f32[16,32], index: 9, kind: input, shape index: {}]   ;;  %s1635_s10 = inlined_call_operand.vmem [shape: f32[16,1], index: 10, kind: input, shape index: {}]   ;;  %s1636_s11 = inlined_call_operand.hbm [shape: f32[2,16,128], index: 11, kind: output, shape index: {}]  }
   0x1   :  { %1637 = sst [smem:[#allocation7_spill]] %s1625_s0 }
   0x2   :  { %16 = sst [smem:[#allocation2]] %s1628_s3 }
   0x3   :  { %17 = sst [smem:[#allocation3]] %s1633_s8 }
   0x4   :  { %18 = vsyncpa [#allocation5], 0 }
   0x5   :  { %20 = vsyncpa [#allocation5 + $0x1], 0  ;;  %s1328_s21 = smov 0   ;;  %s1330_s22 = smov 0  }
   0x6   :  { %s1332_s23 = smov 0   ;;  %s1334_s24 = smov 0  }
   0x7 LB: > { %s1349_s3 = sadd.s32 4294967295, %s1251_s24   ;;  %s1063_s8 = sadd.s32 4294967294, %s1251_s24   ;;  %s1251_s24 = sphi %s1334_s24, %s1644_s24   ;;  %s1247_s23 = sphi %s1332_s23, %s1643_s23   ;;  %s1243_s22 = sphi %s1330_s22, %s1642_s22   ;;  %s1239_s21 = sphi %s1328_s21, %s1641_s21  }
   0x8   : > { %s1353_s25 = sadd.s32 1, %s1251_s24   ;;  %s269_s26 = sadd.s32 1, %s1247_s23 }
   0x9   : > { %s266_s27 = ssub.s32 %s1251_s24, %s1353_s25  ;;  %p279_p0 = scmp.ne.s32.totalorder %s1247_s23, %s1243_s22 }
   0xa   : > { %p267_p1 = scmp.eq.s32.totalorder %s266_s27, 0  ;;  %p280_p2 = scmp.eq.s32.totalorder %s1349_s3, 1 }
   0xb   : > { %p285_p3 = scmp.ne.s32.totalorder %s1243_s22, %s1239_s21  ;;  %p286_p4 = scmp.eq.s32.totalorder %s1063_s8, 1 }
   0xc   : > { %s1364_s28 = scalar_select %p267_p1, %s1247_s23, %s269_s26  }
   0xd   : > { %p1366_p5 = por %p280_p2, %p279_p0  ;;  %p1370_p6 = por %p286_p4, %p285_p3 }
   0xe   : > { %p1066_p7 = scmp.ge.s32.totalorder %s1251_s24, 1  ;;  %p342_p8 = scmp.lt.s32.totalorder %s1251_s24, 3 }
  0x10   : > { %p343_p9 = pnand %p1066_p7, %p342_p8 }
  0x11   : > { %p382_p10 = scmp.lt.s32.totalorder (!%p343_p9), %s1349_s3, 1  ;;  %s1640_s0 = sld [smem:[#allocation7_spill]] (!%p343_p9) }
  0x12   : > { %346 = sbr.rel (%p343_p9) target bundleno = 1425 (0x591), region = 64  ;;  %s1254_s16 = smov (!%p343_p9), 0.0  }
  0x17   : > { %v387_v0 = vld [vmem:[%s1626_s1] sm:$0xff]  ;;  %vm447_vm0 = vcmask 130048   ;;  %v1253_v1 = vmov 0   ;;  %v393_v3 = vld [vmem:[%s1627_s2 + $0x10] sm:$0xff]  ;;  %s383_s18 = scalar_select %p382_p10, %s1349_s3, 1  ;;  %v392_v4 = vld [vmem:[%s1627_s2 + $0x8] sm:$0xff] }
  0x18   : > { %1099 = vmatprep.mubr.msk.f32.mxu0 %vm447_vm0, %v387_v0  ;;  %1175 = vset.pattern.permute.xlu0 %v1253_v1  ;;  %v391_v2 = vld [vmem:[%s1627_s2] sm:$0xff]  ;;  %v394_v5 = vld [vmem:[%s1627_s2 + $0x18] sm:$0xff]  ;;  %v388_v8 = vld [vmem:[%s1626_s1 + $0x8] sm:$0xff]  ;;  %vm903_vm11 = vcmask 261120  }
  0x19   : > { %429 = vperm.xlu0 %1175, %v391_v2   ;;  %1176 = vset.pattern.permute.xlu1 %v1253_v1  ;;  %s1081_s8 = sshll.u32 %s383_s18, 4  ;;  %v389_v9 = vld [vmem:[%s1626_s1 + $0x10] sm:$0xff]  ;;  %v390_v10 = vld [vmem:[%s1626_s1 + $0x18] sm:$0xff]  ;;  %v1435_v58 = vld [vmem:[%s1629_s4 + $0x8] sm:$0xff] }
  0x1a   : > { %439 = vperm.xlu1 %1176, %v393_v3   ;;  %s386_s14 = scalar_lea.vmem %s1640_s0, %s1081_s8  ;;  %s411_s8 = sld [smem:[#allocation2]]  ;;  %v1440_v59 = vld [vmem:[%s1629_s4] sm:$0xff]  ;;  %v1447_v63 = vld [vmem:[%s1629_s4 + $0x18] sm:$0xff]  ;;  %v1452_v0 = vld [vmem:[%s1629_s4 + $0x10] sm:$0xff] }
  0x1b   : > { %v426_v6 = vld [vmem:[%s386_s14 + $0x8] sm:$0xff]  ;;  %v425_v7 = vld [vmem:[%s386_s14] sm:$0xff]  ;;  %s1257_s0 = smov 2  }
  0x1c   : > { %1095 = vmatprep.subr.mxu0 %v426_v6 }
  0x1d   : > { %434 = vperm.xlu0 %1175, %v392_v4   ;;  %1096 = vmatpush3.msra.mxu0 %v426_v6 }
  0x1e   : > { %444 = vperm.xlu1 %1176, %v394_v5   ;;  %1097 = vmatprep.subr.mxu0 %v425_v7 }
  0x1f   : > { %1098 = vmatpush3.msra.mxu0 %v425_v7  ;;  %v1459_v7 = vld [vmem:[%s1630_s5 + $0x8] sm:$0xff] }
  0x20   : > { %1100 = vmatmul.mubr.msk.f32.vlgmr.msra.gmra.mxu0 %vm447_vm0, %v388_v8  ;;  %v549_v15 = vstv %s411_s8  ;;  %v1464_v8 = vld [vmem:[%s1630_s5] sm:$0xff] }
  0x21   : > { %1102 = vmatprep.mubr.msk.f32.mxu0 %vm447_vm0, %v389_v9 }
  0x24   : > { %1103 = vmatmul.mubr.msk.f32.gmra.mxu0 %vm447_vm0, %v390_v10 }
  0x94   : > { %v430_v11 = vpop.permute.xlu0 %429 }
  0x95   : > { %v440_v12 = vpop.permute.xlu1 %439 }
  0x98   : > { %v435_v13 = vpop.permute.xlu0 %434 }
  0x99   : > { %v445_v18 = vpop.permute.xlu1 %444 }
  0xe0   : > { %v1101_v14 = vpop.f32.mrf.mxu0 }
  0xe1   : > { %v532_v16 = vadd.f32 %v1101_v14, %v435_v13  ;;  %v1471_v13 = vld [vmem:[%s1630_s5 + $0x10] sm:$0xff]  ;;  %v1476_v14 = vld [vmem:[%s1630_s5 + $0x18] sm:$0xff] }
  0xe2   : > { %v526_v17 = vpop.f32.mrf.mxu0 }
  0xe3   : > { %v551_v19 = vmul.f32 %v549_v15, %v532_v16  ;;  %v527_v20 = vadd.f32 %v526_v17, %v430_v11  ;;  %vm546_vm1 = vcmp.gt.f32.partialorder %v532_v16, 0.0  ;;  %v414_v17 = vld [vmem:[%s1631_s6 + $0x8] sm:$0xff] }
  0xe4   : > { %v1104_v21 = vpop.f32.mrf.mxu0 }
  0xe5   : > { %vm545_vm2 = vcmp.gt.f32.partialorder %v527_v20, 0.0  ;;  %v550_v22 = vmul.f32 %v549_v15, %v527_v20  ;;  %v542_v23 = vadd.f32 %v1104_v21, %v445_v18  ;;  %v1411_v25 = vsel %vm546_vm1, %v532_v16, %v551_v19  ;;  %v403_v19 = vld [vmem:[%s1632_s7] sm:$0xff] }
  0xe6   : > { %v536_v24 = vpop.f32.mrf.mxu0  ;;  %v572_v31 = vmul.f32 %v1411_v25, %v1411_v25  ;;  %v1255_v18 = vmov 1   ;;  %v1256_v21 = vmov 2  }
  0xe7   : > { %v1413_v26 = vsel %vm545_vm2, %v527_v20, %v550_v22  ;;  %v553_v27 = vmul.f32 %v549_v15, %v542_v23  ;;  %v537_v28 = vadd.f32 %v536_v24, %v440_v12  ;;  %vm548_vm3 = vcmp.gt.f32.partialorder %v542_v23, 0.0  ;;  %v413_v20 = vld [vmem:[%s1631_s6] sm:$0xff]  ;;  %v405_v22 = vld [vmem:[%s1632_s7 + $0x10] sm:$0xff]  ;;  %v404_v24 = vld [vmem:[%s1632_s7 + $0x8] sm:$0xff] }
  0xe8   : > { %v571_v29 = vmul.f32 %v1413_v26, %v1413_v26  ;;  %v558_v32 = vadd.f32 %v1411_v25, %v1413_v26 }
  0xe9   : > { %vm547_vm4 = vcmp.gt.f32.partialorder %v537_v28, 0.0  ;;  %v552_v30 = vmul.f32 %v549_v15, %v537_v28  ;;  %v1423_v34 = vsel %vm548_vm3, %v542_v23, %v553_v27  ;;  %v415_v23 = vld [vmem:[%s1631_s6 + $0x10] sm:$0xff]  ;;  %v416_v27 = vld [vmem:[%s1631_s6 + $0x18] sm:$0xff] }
  0xea   : > { %v575_v37 = vadd.f32 %v572_v31, %v571_v29  ;;  %v574_v39 = vmul.f32 %v1423_v34, %v1423_v34 }
  0xeb   : > { %v1421_v33 = vsel %vm547_vm4, %v537_v28, %v552_v30  ;;  %v406_v28 = vld [vmem:[%s1632_s7 + $0x18] sm:$0xff] }
  0xec   : > { %v559_v35 = vadd.f32 %v558_v32, %v1421_v33  ;;  %v573_v36 = vmul.f32 %v1421_v33, %v1421_v33 }
  0xee   : > { %v560_v38 = vadd.f32 %v559_v35, %v1423_v34  ;;  %v576_v40 = vadd.f32 %v575_v37, %v573_v36 }
  0xf0   : > { %561 = vadd.xlane.f32.xlu0 %v560_v38  ;;  %v577_v41 = vadd.f32 %v576_v40, %v574_v39 }
  0xf2   : > { %578 = vadd.xlane.f32.xlu1 %v577_v41 }
 0x179   : > { %v562_v42 = vpop.xlane.xlu0 %561 }
 0x17a   : > { %v563_v43 = vrot.slane %v562_v42, 4 }
 0x17b   : > { %v579_v44 = vpop.xlane.xlu1 %578 }
 0x17c   : > { %v564_v45 = vadd.f32 %v563_v43, %v562_v42  ;;  %v580_v46 = vrot.slane %v579_v44, 4 }
 0x17e   : > { %v565_v47 = vrot.slane %v564_v45, 2  ;;  %v581_v48 = vadd.f32 %v580_v46, %v579_v44 }
 0x180   : > { %v582_v49 = vrot.slane %v581_v48, 2  ;;  %v566_v50 = vadd.f32 %v565_v47, %v564_v45 }
 0x182   : > { %v567_v51 = vrot.slane %v566_v50, 1  ;;  %v583_v52 = vadd.f32 %v582_v49, %v581_v48 }
 0x184   : > { %v568_v53 = vadd.f32 %v567_v51, %v566_v50  ;;  %v584_v54 = vrot.slane %v583_v52, 1 }
 0x186   : > { %1116 = vpush %v568_v53  ;;  %v585_v55 = vadd.f32 %v584_v54, %v583_v52 }
 0x188   : > { %1118 = vpush %v585_v55  ;;  %v417_v55 = vlaneseq }
 0x1b7   : > { %s1117_s26 = spop %1116 }
 0x1b8   : > { %s570_s27 = smul.f32 0.00024414063, %s1117_s26 }
 0x1b9   : > { %s1119_s12 = spop %1118 }
 0x1ba   : > { %s588_s13 = smul.f32 %s570_s27, %s570_s27  ;;  %v624_v2 = vstv %s570_s27 }
 0x1bb   : > { %s587_s14 = smul.f32 0.00024414063, %s1119_s12 }
 0x1bd   : > { %s589_s15 = ssub.f32 %s587_s14, %s588_s13 }
 0x1bf   : > { %s590_s17 = smax.f32 %s1254_s16, %s589_s15 }
 0x1c0   : > { %s591_s18 = sadd.f32 1e-08, %s590_s17  ;;  %s1258_s17 = smov 126  }
 0x1c2   : > { %v592_v56 = vstv %s591_s18  ;;  %s412_s18 = sld [smem:[#allocation3]] }
 0x1c3   : > { %1187 = vrsqrt.f32 %v592_v56 }
 0x1d0   : > { %v1188_v57 = vpop.eup %1187 }
 0x1d1   : > { %1120 = vpush %v1188_v57 }
 0x202   : > { %s1121_s26 = spop %1120 }
 0x203   : > { %v595_v60 = vstv %s1121_s26 }
 0x204   : > { %v597_v61 = vmul.f32 %v595_v60, %v1435_v58  ;;  %v596_v62 = vmul.f32 %v595_v60, %v1440_v59  ;;  %v599_v3 = vmul.f32 %v595_v60, %v1447_v63  ;;  %v598_v4 = vmul.f32 %v595_v60, %v1452_v0 }
 0x205   : > { %v418_v60 = vand.u32 127, %v417_v55 }
 0x206   : > { %607 = vperm.xlu1 %1176, %v597_v61   ;;  %602 = vperm.xlu0 %1175, %v596_v62   ;;  %v626_v5 = vmul.f32 %v624_v2, %v597_v61  ;;  %v625_v6 = vmul.f32 %v624_v2, %v596_v62  ;;  %v627_v11 = vmul.f32 %v624_v2, %v598_v4 }
 0x207   : > { %v628_v12 = vmul.f32 %v624_v2, %v599_v3  ;;  %vm419_vm5 = vcmp.ge.s32.totalorder %v418_v60, 2  ;;  %vm423_vm6 = vcmp.lt.s32.totalorder %v418_v60, 126 }
 0x208   : > { %v630_v9 = vsub.f32 %v1459_v7, %v626_v5  ;;  %v629_v10 = vsub.f32 %v1464_v8, %v625_v6  ;;  %v631_v15 = vsub.f32 %v1471_v13, %v627_v11 }
 0x209   : > { %v632_v16 = vsub.f32 %v1476_v14, %v628_v12 }
 0x20a   : > { %617 = vperm.xlu1 %1176, %v599_v3   ;;  %612 = vperm.xlu0 %1175, %v598_v4  }
 0x20e   : > { %640 = vperm.xlu0 %1175, %v630_v9   ;;  %635 = vperm.xlu1 %1176, %v629_v10  }
 0x212   : > { %645 = vperm.xlu0 %1175, %v631_v15   ;;  %650 = vperm.xlu1 %1176, %v632_v16  }
 0x216   : > { %1178 = vset.pattern.permute.xlu0 %v1255_v18  ;;  %678 = vperm.xlu1 %1176, %v414_v17  }
 0x217   : > { %724 = vperm.xlu0 %1178, %v414_v17  }
 0x21a   : > { %697 = vperm.xlu1 %1176, %v403_v19  }
 0x21b   : > { %1181 = vset.pattern.permute.xlu0 %v1256_v21 }
 0x21c   : > { %758 = vperm.xlu0 %1181, %v413_v20  }
 0x21e   : > { %1177 = vset.pattern.permute.xlu1 %v1255_v18 }
 0x21f   : > { %720 = vperm.xlu1 %1177, %v413_v20  }
 0x220   : > { %1182 = vset.pattern.permute.xlu0 %v1253_v1 }
 0x221   : > { %673 = vperm.xlu0 %1182, %v413_v20  }
 0x223   : > { %1179 = vset.pattern.permute.xlu1 %v1253_v1 }
 0x224   : > { %707 = vperm.xlu1 %1179, %v405_v22  }
 0x225   : > { %683 = vperm.xlu0 %1182, %v415_v23  }
 0x228   : > { %1180 = vset.pattern.permute.xlu1 %v1255_v18 }
 0x229   : > { %728 = vperm.xlu1 %1180, %v415_v23   ;;  %702 = vperm.xlu0 %1182, %v404_v24   ;;  %v785_v24 = vstv %s412_s18 }
 0x22d   : > { %1183 = vset.pattern.permute.xlu1 %v1256_v21  ;;  %688 = vperm.xlu0 %1182, %v416_v27  }
 0x22e   : > { %762 = vperm.xlu1 %1183, %v414_v17  }
 0x231   : > { %712 = vperm.xlu0 %1182, %v406_v28  }
 0x232   : > { %1184 = vset.pattern.permute.xlu1 %v1255_v18 }
 0x233   : > { %732 = vperm.xlu1 %1184, %v416_v27  }
 0x237   : > { %1185 = vset.pattern.permute.xlu1 %v1256_v21 }
 0x238   : > { %766 = vperm.xlu1 %1185, %v415_v23  }
 0x23c   : > { %770 = vperm.xlu1 %1185, %v416_v27  }
 0x240   : > { %1186 = vset.pattern.permute.xlu1 %v1253_v1 }
 0x281   : > { %v608_v29 = vpop.permute.xlu1 %607  ;;  %v603_v30 = vpop.permute.xlu0 %602 }
 0x282   : > { %v620_v35 = vmul.f32 %v603_v30, %v1413_v26  ;;  %v621_v39 = vmul.f32 %v608_v29, %v1411_v25 }
 0x285   : > { %v618_v31 = vpop.permute.xlu1 %617  ;;  %v613_v32 = vpop.permute.xlu0 %612 }
 0x286   : > { %v623_v40 = vmul.f32 %v618_v31, %v1423_v34  ;;  %v622_v44 = vmul.f32 %v613_v32, %v1421_v33 }
 0x289   : > { %v641_v36 = vpop.permute.xlu0 %640  ;;  %v636_v37 = vpop.permute.xlu1 %635 }
 0x28a   : > { %v1508_v38 = vadd.f32 %v636_v37, %v620_v35  ;;  %v654_v42 = vadd.f32 %v641_v36, %v621_v39 }
 0x28c   : > { %657 = vrot.lane.b32.xlu1 %v1508_v38, %s1257_s0 }
 0x28d   : > { %v651_v41 = vpop.permute.xlu1 %650  ;;  %v646_v43 = vpop.permute.xlu0 %645 }
 0x28e   : > { %v1513_v1 = vadd.f32 %v651_v41, %v623_v40  ;;  %v655_v26 = vadd.f32 %v646_v43, %v622_v44 }
 0x290   : > { %659 = vrot.lane.b32.xlu1 %v654_v42, %s1257_s0  ;;  %663 = vrot.lane.b32.xlu0 %v1513_v1, %s1257_s0 }
 0x291   : > { %v679_v25 = vpop.permute.xlu1 %678 }
 0x292   : > { %v725_v45 = vpop.permute.xlu0 %724 }
 0x293   : > { %v736_v11 = vmul.f32 %v725_v45, %v654_v42 }
 0x294   : > { %661 = vrot.lane.b32.xlu1 %v655_v26, %s1257_s0  ;;  %745 = vrot.lane.b32.xlu0 %v654_v42, %s1258_s17 }
 0x295   : > { %v698_v34 = vpop.permute.xlu1 %697 }
 0x297   : > { %v759_v48 = vpop.permute.xlu0 %758 }
 0x298   : > { %743 = vrot.lane.b32.xlu1 %v1508_v38, %s1258_s17  ;;  %747 = vrot.lane.b32.xlu0 %v655_v26, %s1258_s17 }
 0x29a   : > { %v721_v46 = vpop.permute.xlu1 %720 }
 0x29b   : > { %v735_v32 = vmul.f32 %v721_v46, %v1508_v38 }
 0x29c   : > { %749 = vrot.lane.b32.xlu1 %v1513_v1, %s1258_s17  ;;  %v674_v33 = vpop.permute.xlu0 %673 }
 0x29f   : > { %v708_v47 = vpop.permute.xlu1 %707 }
 0x2a0   : > { %v684_v51 = vpop.permute.xlu0 %683 }
 0x2a4   : > { %v729_v49 = vpop.permute.xlu1 %728  ;;  %v703_v53 = vpop.permute.xlu0 %702 }
 0x2a5   : > { %v737_v27 = vmul.f32 %v729_v49, %v655_v26 }
 0x2a8   : > { %v689_v56 = vpop.permute.xlu0 %688 }
 0x2a9   : > { %v763_v50 = vpop.permute.xlu1 %762 }
 0x2ac   : > { %v713_v61 = vpop.permute.xlu0 %712 }
 0x2ae   : > { %v733_v52 = vpop.permute.xlu1 %732 }
 0x2af   : > { %v738_v42 = vmul.f32 %v733_v52, %v1513_v1 }
 0x2b3   : > { %v767_v54 = vpop.permute.xlu1 %766 }
 0x2b7   : > { %v771_v57 = vpop.permute.xlu1 %770 }
 0x2fe   : > { %v658_v62 = vpop.permute.xlu1 %657 }
 0x2ff   : > { %v667_v2 = vsel %vm419_vm5, %v658_v62, 0.0 }
 0x300   : > { %v691_v10 = vmul.f32 %v674_v33, %v667_v2 }
 0x302   : > { %v664_v3 = vpop.permute.xlu0 %663  ;;  %v660_v4 = vpop.permute.xlu1 %659  ;;  %v715_v23 = vadd.f32 %v698_v34, %v691_v10 }
 0x303   : > { %v668_v5 = vsel %vm419_vm5, %v660_v4, 0.0  ;;  %v670_v6 = vsel %vm419_vm5, %v664_v3, 0.0 }
 0x304   : > { %v692_v9 = vmul.f32 %v679_v25, %v668_v5  ;;  %v694_v17 = vmul.f32 %v689_v56, %v670_v6  ;;  %v739_v43 = vadd.f32 %v735_v32, %v715_v23 }
 0x306   : > { %v716_v12 = vadd.f32 %v703_v53, %v692_v9  ;;  %v746_v15 = vpop.permute.xlu0 %745  ;;  %v662_v16 = vpop.permute.xlu1 %661  ;;  %v718_v35 = vadd.f32 %v713_v61, %v694_v17 }
 0x307   : > { %v754_v18 = vsel %vm423_vm6, %v746_v15, 0.0  ;;  %v669_v19 = vsel %vm419_vm5, %v662_v16, 0.0 }
 0x308   : > { %v740_v20 = vadd.f32 %v736_v11, %v716_v12  ;;  %v774_v21 = vmul.f32 %v763_v50, %v754_v18  ;;  %v693_v22 = vmul.f32 %v684_v51, %v669_v19  ;;  %v742_v45 = vadd.f32 %v738_v42, %v718_v35 }
 0x30a   : > { %v778_v28 = vadd.f32 %v774_v21, %v740_v20  ;;  %v717_v29 = vadd.f32 %v708_v47, %v693_v22  ;;  %v748_v30 = vpop.permute.xlu0 %747  ;;  %v744_v31 = vpop.permute.xlu1 %743 }
 0x30b   : > { %v755_v36 = vsel %vm423_vm6, %v748_v30, 0.0  ;;  %v753_v37 = vsel %vm423_vm6, %v744_v31, 0.0 }
 0x30c   : > { %v787_v39 = vmul.f32 %v785_v24, %v778_v28  ;;  %v741_v40 = vadd.f32 %v737_v27, %v717_v29  ;;  %v775_v41 = vmul.f32 %v767_v54, %v755_v36  ;;  %vm782_vm7 = vcmp.gt.f32.partialorder %v778_v28, 0.0 }
 0x30d   : > { %v773_v44 = vmul.f32 %v759_v48, %v753_v37 }
 0x30e   : > { %v779_v26 = vadd.f32 %v775_v41, %v741_v40  ;;  %v750_v25 = vpop.permute.xlu1 %749  ;;  %v1529_v49 = vsel %vm782_vm7, %v778_v28, %v787_v39 }
 0x30f   : > { %v777_v34 = vadd.f32 %v773_v44, %v739_v43  ;;  %v756_v47 = vsel %vm423_vm6, %v750_v25, 0.0  ;;  %v808_v48 = vmul.f32 %v1529_v49, %v1529_v49 }
 0x310   : > { %v788_v38 = vmul.f32 %v785_v24, %v779_v26  ;;  %v776_v46 = vmul.f32 %v771_v57, %v756_v47  ;;  %vm783_vm8 = vcmp.gt.f32.partialorder %v779_v26, 0.0 }
 0x311   : > { %vm781_vm9 = vcmp.gt.f32.partialorder %v777_v34, 0.0  ;;  %v786_v33 = vmul.f32 %v785_v24, %v777_v34 }
 0x312   : > { %v780_v50 = vadd.f32 %v776_v46, %v742_v45  ;;  %v1533_v1 = vsel %vm783_vm8, %v779_v26, %v788_v38 }
 0x313   : > { %v1531_v51 = vsel %vm781_vm9, %v777_v34, %v786_v33  ;;  %v809_v57 = vmul.f32 %v1533_v1, %v1533_v1 }
 0x314   : > { %v789_v52 = vmul.f32 %v785_v24, %v780_v50  ;;  %vm784_vm10 = vcmp.gt.f32.partialorder %v780_v50, 0.0  ;;  %v794_v53 = vadd.f32 %v1529_v49, %v1531_v51  ;;  %v807_v54 = vmul.f32 %v1531_v51, %v1531_v51 }
 0x316   : > { %v1541_v55 = vsel %vm784_vm10, %v780_v50, %v789_v52  ;;  %v795_v56 = vadd.f32 %v794_v53, %v1533_v1  ;;  %v811_v60 = vadd.f32 %v808_v48, %v807_v54 }
 0x317   : > { %v810_v61 = vmul.f32 %v1541_v55, %v1541_v55 }
 0x318   : > { %v796_v62 = vadd.f32 %v795_v56, %v1541_v55  ;;  %v812_v2 = vadd.f32 %v811_v60, %v809_v57 }
 0x31a   : > { %797 = vadd.xlane.f32.xlu0 %v796_v62  ;;  %v813_v3 = vadd.f32 %v812_v2, %v810_v61 }
 0x31c   : > { %814 = vadd.xlane.f32.xlu1 %v813_v3 }
 0x3a3   : > { %v798_v4 = vpop.xlane.xlu0 %797 }
 0x3a4   : > { %v799_v5 = vrot.slane %v798_v4, 4 }
 0x3a5   : > { %v815_v6 = vpop.xlane.xlu1 %814 }
 0x3a6   : > { %v800_v9 = vadd.f32 %v799_v5, %v798_v4  ;;  %v816_v10 = vrot.slane %v815_v6, 4 }
 0x3a8   : > { %v801_v11 = vrot.slane %v800_v9, 2  ;;  %v817_v12 = vadd.f32 %v816_v10, %v815_v6 }
 0x3aa   : > { %v818_v15 = vrot.slane %v817_v12, 2  ;;  %v802_v16 = vadd.f32 %v801_v11, %v800_v9 }
 0x3ac   : > { %v803_v17 = vrot.slane %v802_v16, 1  ;;  %v819_v18 = vadd.f32 %v818_v15, %v817_v12 }
 0x3ae   : > { %v804_v19 = vadd.f32 %v803_v17, %v802_v16  ;;  %v820_v20 = vrot.slane %v819_v18, 1 }
 0x3b0   : > { %1122 = vpush %v804_v19  ;;  %v821_v21 = vadd.f32 %v820_v20, %v819_v18 }
 0x3b2   : > { %1124 = vpush %v821_v21 }
 0x3e1   : > { %s1123_s19 = spop %1122 }
 0x3e2   : > { %s806_s27 = smul.f32 0.00024414063, %s1123_s19 }
 0x3e3   : > { %s1125_s20 = spop %1124 }
 0x3e4   : > { %s824_s8 = smul.f32 %s806_s27, %s806_s27  ;;  %v860_v29 = vstv %s806_s27 }
 0x3e5   : > { %s823_s26 = smul.f32 0.00024414063, %s1125_s20 }
 0x3e7   : > { %s825_s12 = ssub.f32 %s823_s26, %s824_s8  ;;  %s379_s26 = sand.u32 1, %s1243_s22  }
 0x3e8   : > { %s1585_s18 = scalar_lea.sflag [#allocation5], %s379_s26 }
 0x3e9   : > { %s826_s13 = smax.f32 %s1254_s16, %s825_s12  ;;  %s1067_s12 = sshll.u32 %s379_s26, 4 }
 0x3ea   : > { %s827_s14 = sadd.f32 1e-08, %s826_s13  ;;  %s381_s13 = scalar_lea.vmem [#allocation4], %s1067_s12 }
 0x3ec   : > { %v828_v22 = vstv %s827_s14  ;;  %s1001_s14 = sshll.u32 %s381_s13, 4  ;;  %s1578_s14 = int_to_ptr.vmem [resolvable:$true] %s1001_s14 }
 0x3ed   : > { %1189 = vrsqrt.f32 %v828_v22  ;;  %s1191_s19 = scalar_lea.vmem %s1578_s14, 256 }
 0x3ee   : > { %p1192_p11 = scmp.ne.s32.totalorder %s1578_s14, %s1191_s19 }
 0x3f0   : > { %p1193_p12 = pnand %p1192_p11, %p1366_p5 }
 0x3f2   : > { %p1194_p13 = pneg %p1193_p12 }
 0x3fa   : > { %v1190_v23 = vpop.eup %1189 }
 0x3fb   : > { %1126 = vpush %v1190_v23 }
 0x42c   : > { %s1127_s15 = spop %1126 }
 0x42d   : > { %v831_v24 = vstv %s1127_s15  ;;  %s1082_s15 = sshll.u32 %s1349_s3, 8  ;;  %s1259_s3 = smov [#allocation4]  }
 0x42e   : > { %v834_v27 = vmul.f32 %v831_v24, %v1452_v0  ;;  %v835_v28 = vmul.f32 %v831_v24, %v1447_v63  ;;  %v833_v31 = vmul.f32 %v831_v24, %v1435_v58  ;;  %v832_v36 = vmul.f32 %v831_v24, %v1440_v59  ;;  %v409_v58 = vld [vmem:[%s1635_s10] sm:$0xff]  ;;  %s1583_s17 = scalar_lea.hbm %s1636_s11, %s1082_s15  ;;  %s1195_s27 = sshll.u32 %s1259_s3, 4  ;;  %s1196_s27 = int_to_ptr.vmem [resolvable:$false] %s1195_s27 }
 0x42f   : > { %v407_v59 = vld [vmem:[%s1634_s9] sm:$0xff]  ;;  %s1197_s20 = scalar_lea.vmem %s1196_s27, 512  ;;  %p1198_p0 = scmp.lt.s32.totalorder %s1578_s14, %s1196_s27 }
 0x430   : > { %v864_v30 = vmul.f32 %v860_v29, %v835_v28  ;;  %853 = vperm.xlu0 %1182, %v835_v28   ;;  %848 = vperm.xlu1 %1186, %v834_v27   ;;  %v863_v32 = vmul.f32 %v860_v29, %v834_v27  ;;  %v862_v37 = vmul.f32 %v860_v29, %v833_v31  ;;  %p1199_p1 = scmp.lt.s32.totalorder %s1197_s20, %s1191_s19 }
 0x431   : > { %v861_v40 = vmul.f32 %v860_v29, %v832_v36  ;;  %1113 = vmatprep.mubr.msk.f32.mxu1 %vm903_vm11, %v407_v59 }
 0x432   : > { %v868_v35 = vsub.f32 %v1476_v14, %v864_v30  ;;  %v867_v39 = vsub.f32 %v1471_v13, %v863_v32  ;;  %v866_v63 = vsub.f32 %v1459_v7, %v862_v37  ;;  %v410_v13 = vld [vmem:[%s1635_s10 + $0x8] sm:$0xff]  ;;  %p1200_p2 = por %p1199_p1, %p1198_p0 }
 0x433   : > { %v865_v0 = vsub.f32 %v1464_v8, %v861_v40 }
 0x434   : > { %886 = vperm.xlu0 %1182, %v868_v35   ;;  %843 = vperm.xlu1 %1186, %v833_v31   ;;  %p1201_p3 = pnand %p1200_p2, %p1194_p13 }
 0x438   : > { %881 = vperm.xlu0 %1182, %v867_v39   ;;  %838 = vperm.xlu1 %1186, %v832_v36  }
 0x43c   : > { %876 = vperm.xlu0 %1182, %v866_v63   ;;  %871 = vperm.xlu1 %1186, %v865_v0  }
 0x440   : > { %895 = vperm.xlu0 %1182, %v409_v58   ;;  %900 = vperm.xlu1 %1186, %v410_v13  }
 0x4ab   : > { %v854_v7 = vpop.permute.xlu0 %853  ;;  %v849_v8 = vpop.permute.xlu1 %848 }
 0x4ac   : > { %v859_v14 = vmul.f32 %v854_v7, %v1541_v55  ;;  %v858_v44 = vmul.f32 %v849_v8, %v1533_v1  ;;  %v408_v1 = vld [vmem:[%s1634_s9 + $0x8] sm:$0xff] }
 0x4af   : > { %v887_v41 = vpop.permute.xlu0 %886  ;;  %v844_v43 = vpop.permute.xlu1 %843 }
 0x4b0   : > { %v892_v42 = vadd.f32 %v887_v41, %v859_v14  ;;  %v857_v45 = vmul.f32 %v844_v43, %v1529_v49 }
 0x4b2   : > { %1105 = vmatprep.subr.mxu1 %v892_v42 }
 0x4b3   : > { %1106 = vmatpush3.msra.mxu1 %v892_v42  ;;  %v882_v26 = vpop.permute.xlu0 %881  ;;  %v839_v34 = vpop.permute.xlu1 %838 }
 0x4b4   : > { %v891_v25 = vadd.f32 %v882_v26, %v858_v44  ;;  %v856_v38 = vmul.f32 %v839_v34, %v1531_v51 }
 0x4b6   : > { %1107 = vmatprep.subr.mxu1 %v891_v25 }
 0x4b7   : > { %1108 = vmatpush3.msra.mxu1 %v891_v25  ;;  %v877_v47 = vpop.permute.xlu0 %876  ;;  %v872_v33 = vpop.permute.xlu1 %871 }
 0x4b8   : > { %v890_v46 = vadd.f32 %v877_v47, %v857_v45  ;;  %v889_v50 = vadd.f32 %v872_v33, %v856_v38 }
 0x4ba   : > { %1109 = vmatprep.subr.mxu1 %v890_v46 }
 0x4bb   : > { %1110 = vmatpush3.msra.mxu1 %v890_v46  ;;  %v901_v49 = vpop.permute.xlu1 %900  ;;  %v896_v52 = vpop.permute.xlu0 %895 }
 0x4bc   : > { %1111 = vmatprep.subr.mxu1 %v889_v50 }
 0x4bd   : > { %1112 = vmatpush3.msra.mxu1 %v889_v50 }
 0x4be   : > { %1114 = vmatmul.mubr.msk.f32.vlgmr.msra.gmra.mxu1 %vm903_vm11, %v408_v1 }
 0x57e   : > { %v1115_v51 = vpop.f32.mrf.mxu1 }
 0x57f   : > { %v982_v48 = vadd.f32 %v1115_v51, %v901_v49 }
 0x580   : > { %v976_v53 = vpop.f32.mrf.mxu1 }
 0x581   : > { %986 = vst [vmem:[%s381_s13 + $0x8] sm:$0xff] %v982_v48  ;;  %v977_v54 = vadd.f32 %v976_v53, %v896_v52 }
 0x583   : > { %985 = vst [vmem:[%s381_s13] sm:$0xff] %v977_v54 }
 0x584   : > { %1204 = shalt.err (!%p1201_p3)
}
 0x585   : > { %s1205_s8 = scalar_lea.hbm %s1583_s17, 256  ;;  %s1209_s13 = scalar_lea.hbm %s1636_s11, 512 }
 0x586   : > { %p1206_p4 = scmp.ne.s32.totalorder %s1583_s17, %s1205_s8  ;;  %p1210_p9 = scmp.lt.s32.totalorder %s1583_s17, %s1636_s11 }
 0x587   : > { %p1211_p10 = scmp.lt.s32.totalorder %s1209_s13, %s1205_s8 }
 0x588   : > { %p1207_p7 = pnand %p1206_p4, %p1366_p5 }
 0x589   : > { %p1212_p11 = por %p1211_p10, %p1210_p9 }
 0x58a   : > { %p1208_p8 = pneg %p1207_p7 }
 0x58c   : > { %p1213_p12 = pnand %p1212_p11, %p1208_p8 }
 0x58e   : > { %1216 = shalt.err (!%p1213_p12)
}
 0x58f   : > { %s1260_s0 = smov 128   ;;  %s1261_s19 = smov 8  }
 0x590   : > { %1128 = dma.vmem_to_hbm [thread:$0]  (%p1366_p5), %s1578_s14, 256, %s1583_s17, %s1585_s18, %s1260_s0, %s1260_s0, %s1261_s19  }
 0x591 PF: > { %p1134_p13 = scmp.ge.s32.totalorder %s1251_s24, 2  ;;  %s1016_s3 = sand.u32 1, %s1239_s21  }
 0x592   : > { %s1017_s27 = scalar_lea.sflag [#allocation5], %s1016_s3 }
 0x593   : > { %p1131_p0 = pnand %p1134_p13, %p1370_p6 }
 0x595   : > { %p1132_p1 = pneg %p1131_p0 }
 0x597   : > { %1234 = dma.done.wait (%p1132_p1), %s1017_s27, 256  }
 0x598   : > { %1236 = vsyncadd (%p1132_p1), %s1017_s27, 4294967040  ;;  %p23_p2 = scmp.ge.s32.totalorder %s1353_s25, 4   ;;  %s1641_s21 = smov %s1243_s22 }
 0x599   : > { %s1642_s22 = smov %s1247_s23  ;;  %s1643_s23 = smov %s1364_s28 }
 0x59a   : > { %s1644_s24 = smov %s1353_s25  ;;  %25 = sbr.rel (!%p23_p2) target bundleno = 7 (0x7), region = 99 }
 0x59f   :  { %1022 = vsyncpa [#allocation5], 1 }
 0x5a0   :  { %1024 = vsyncpa [#allocation5 + $0x1], 1 }

</bundles_post_ra>
